<compile_context>
chip_gen: v7x
topology: tpu7x:2x2x1
jax: 0.10.0
libtpu: 0.0.40
codegen_flags: <defaults>
</compile_context>

<pallas_src>
import jax
import jax.numpy as jnp
import numpy as np
from jax.experimental import pallas as pl
from jax.experimental.pallas import tpu as pltpu

OUT_FEATURES = 512


# --------------------------------- kernels ----------------------------------

def _linear_kernel(x_ref, w_ref, b_ref, o_ref):
    """scp=False. x_ref: (tn, C); w_ref: (C, 512); b_ref: (1, 512)."""
    y = jnp.dot(x_ref[...], w_ref[...], preferred_element_type=jnp.float32)
    o_ref[...] = (y + b_ref[...].astype(jnp.float32)).astype(o_ref.dtype)


def _mean_linear_kernel(x_ref, w_ref, b_ref, o_ref, acc_ref):
    """scp=True. Grid = (batch tiles, time blocks); time axis is a reduction.

    x_ref: (tn, C, t_block); acc_ref: (tn, C) f32 running sum over time.
    The mean's 1/T is folded into w by prepare_linear_params, so we only sum.
    """
    t = pl.program_id(1)

    @pl.when(t == 0)
    def _init():
        acc_ref[...] = jnp.zeros_like(acc_ref)

    # Accumulate in f32 (VPU f32 adds; also correct on v5e which has no bf16 VPU).
    acc_ref[...] += jnp.sum(x_ref[...].astype(jnp.float32), axis=-1)

    @pl.when(t == pl.num_programs(1) - 1)
    def _finalize():
        y = jnp.dot(acc_ref[...], w_ref[...], preferred_element_type=jnp.float32)
        o_ref[...] = (y + b_ref[...].astype(jnp.float32)).astype(o_ref.dtype)


# --------------------------------- helpers -----------------------------------

def _round_up(v, m):
    return (v + m - 1) // m * m


def _physical_vmem_bytes():
    try:
        return int(pltpu.get_tpu_info().vmem_capacity_bytes)
    except Exception:
        return 64 << 20  # conservative: v7x per-TensorCore VMEM


def _resident_spec(shape):
    """Invariant operand (constant index_map), single-buffered if supported."""
    idx = lambda *_: (0,) * len(shape)
    try:
        return pl.BlockSpec(tuple(shape), idx, pipeline_mode=pl.Buffered(1))
    except Exception:  # older jax without pipeline_mode / Buffered
        return pl.BlockSpec(tuple(shape), idx)


def _choose_t_block(T, C, itemsize, input_budget):
    """Largest time block (divisor of T) whose minimal (8, C, tb) slab fits."""
    if 8 * C * T * itemsize <= input_budget:
        return T
    if T % 128 != 0:
        # TODO(synk): masked partial-T blocking for T not a multiple of 128.
        return T
    best = 128
    tb = 128
    while tb <= T:
        if T % tb == 0 and 8 * C * tb * itemsize <= input_budget:
            best = tb
        tb += 128
    return best


# ----------------------------- parameter prep --------------------------------

def prepare_linear_params(w_pt, b, scp, time_len=None):
    """One-time (outside the hot path): transpose PyTorch (512, C) weight to a
    lane-dense (C, 512) layout and, for scp=True, fold the mean's 1/T scale in."""
    w = jnp.transpose(w_pt, (1, 0))
    if scp:
        assert time_len is not None, "scp=True needs the time length to fold 1/T"
        w = w * (1.0 / float(time_len))
    b2 = b.reshape(1, -1)
    return w, b2


# --------------------------------- forward -----------------------------------

def linear_encoder_forward(x, w, b2, scp, subject_idxs=None, *,
                           input_tile_budget=None):
    """x: (N, C, T) if scp else (N, C). w: (C, 512) from prepare_linear_params."""
    del subject_idxs                                    # unused in PyTorch forward
    N = x.shape[0]
    C, OUT = w.shape
    assert x.shape[1] == C
    itemsize = x.dtype.itemsize
    out_dtype = jnp.result_type(x.dtype, w.dtype)

    # --- chip-aware VMEM / tile budgets ---
    phys_vmem = _physical_vmem_bytes()
    vmem_target = min(phys_vmem * 3 // 4, 96 << 20)     # ~48 MiB v7x, ~96 MiB v5e/v6e
    if input_tile_budget is None:
        input_tile_budget = max(vmem_target // 4, 1 << 20)

    if scp:
        assert x.ndim == 3
        T = x.shape[2]
        t_block = _choose_t_block(T, C, itemsize, input_tile_budget)
        row_bytes = C * t_block * itemsize
    else:
        assert x.ndim == 2
        T = 1
        t_block = 1
        row_bytes = C * itemsize

    # --- batch tile: multiple of 8 sublanes, large as the budget allows ---
    tn = (input_tile_budget // max(row_bytes, 1)) // 8 * 8
    tn = max(8, min(tn, 1024))
    tn = min(tn, _round_up(N, 8))
    # Ensure >= 2 grid steps along the batch axis when possible so the
    # "parallel" axis can shard across both v7x TensorCores.
    while pl.cdiv(N, tn) < 2 and tn > 8:
        tn = max(8, _round_up(tn // 2, 8))
    nb = pl.cdiv(N, tn)

    w_spec = _resident_spec(w.shape)
    b_spec = _resident_spec(b2.shape)

    if scp:
        grid = (nb, T // t_block)
        x_spec = pl.BlockSpec((tn, C, t_block), lambda i, t: (i, 0, t))
        o_spec = pl.BlockSpec((tn, OUT), lambda i, t: (i, 0))
        scratch = [pltpu.VMEM((tn, C), jnp.float32)]
        kernel = _mean_linear_kernel
        dims = ("parallel", "arbitrary")
    else:
        grid = (nb,)
        x_spec = pl.BlockSpec((tn, C), lambda i: (i, 0))
        o_spec = pl.BlockSpec((tn, OUT), lambda i: (i, 0))
        scratch = []
        kernel = _linear_kernel
        dims = ("parallel",)

    # --- VMEM limit + scheduling cost hint (true, unpadded, native-dtype sizes) ---
    w_bytes = w.size * w.dtype.itemsize
    b_bytes = b2.size * b2.dtype.itemsize
    out_itemsize = np.dtype(out_dtype).itemsize
    need = (2 * tn * row_bytes + 2 * tn * OUT * out_itemsize
            + w_bytes + b_bytes + tn * C * 4 + (2 << 20))
    vmem_limit = int(min(max(need, 16 << 20), max(vmem_target, 32 << 20)))

    flops = 2 * N * C * OUT + (N * C * T if scp else 0)
    bytes_accessed = (x.size * itemsize + w_bytes + b_bytes
                      + N * OUT * out_itemsize)

    return pl.pallas_call(
        kernel,
        out_shape=jax.ShapeDtypeStruct((N, OUT), out_dtype),
        grid_spec=pltpu.PrefetchScalarGridSpec(
            num_scalar_prefetch=0,
            grid=grid,
            in_specs=[x_spec, w_spec, b_spec],
            out_specs=o_spec,
            scratch_shapes=scratch),
        compiler_params=pltpu.CompilerParams(
            dimension_semantics=dims,
            vmem_limit_bytes=vmem_limit),
        cost_estimate=pl.CostEstimate(
            flops=flops, transcendentals=0, bytes_accessed=bytes_accessed),
    )(x, w, b2)


# ---------------------------- pure-JAX reference -----------------------------

def ref_forward(x, w_pt, b, scp):
    if scp:
        x = jnp.mean(x.astype(jnp.float32), axis=-1)
    return x @ w_pt.T.astype(jnp.float32) + b


# ------------------------------------ main -----------------------------------

if __name__ == "__main__":
    ok = True
    root = jax.random.PRNGKey(0)
    kw, kb, kx2, kx3, kw2, kb2, kx4 = jax.random.split(root, 7)

    # Small shapes consistent with the module: batch=2, channel_size=4, time=16.
    N, C, T = 2, 4, 16
    bound = 1.0 / np.sqrt(C)                       # nn.Linear default init range
    w_pt = jax.random.uniform(kw, (OUT_FEATURES, C), jnp.float32, -bound, bound)
    b = jax.random.uniform(kb, (OUT_FEATURES,), jnp.float32, -bound, bound)

    # --- scp = True: X is (N, C, T); mean over time fused with the linear ---
    x3 = jax.random.normal(kx3, (N, C, T), jnp.float32)
    w_s, b_s = prepare_linear_params(w_pt, b, scp=True, time_len=T)
    out = jax.block_until_ready(linear_encoder_forward(x3, w_s, b_s, scp=True))
    ref = jax.block_until_ready(ref_forward(x3, w_pt, b, True))
    ok &= out.shape == (N, OUT_FEATURES)
    ok &= bool(np.allclose(np.asarray(out), np.asarray(ref), rtol=1e-4, atol=1e-4))

    # --- scp = False: X is already (N, channel_size) ---
    x2 = jax.random.normal(kx2, (N, C), jnp.float32)
    w_n, b_n = prepare_linear_params(w_pt, b, scp=False)
    out = jax.block_until_ready(linear_encoder_forward(x2, w_n, b_n, scp=False))
    ref = jax.block_until_ready(ref_forward(x2, w_pt, b, False))
    ok &= out.shape == (N, OUT_FEATURES)
    ok &= bool(np.allclose(np.asarray(out), np.asarray(ref), rtol=1e-4, atol=1e-4))

    # --- stress the T-blocked accumulator + partial last batch block path ---
    # (tiny input_tile_budget forces t_block < T and a masked partial block)
    N2, C2, T2 = 10, 8, 256
    bound2 = 1.0 / np.sqrt(C2)
    w_pt2 = jax.random.uniform(kw2, (OUT_FEATURES, C2), jnp.float32, -bound2, bound2)
    bb2 = jax.random.uniform(kb2, (OUT_FEATURES,), jnp.float32, -bound2, bound2)
    x4 = jax.random.normal(kx4, (N2, C2, T2), jnp.float32)
    w_s2, b_s2 = prepare_linear_params(w_pt2, bb2, scp=True, time_len=T2)
    out = jax.block_until_ready(
        linear_encoder_forward(x4, w_s2, b_s2, scp=True, input_tile_budget=40_000))
    ref = jax.block_until_ready(ref_forward(x4, w_pt2, bb2, True))
    ok &= out.shape == (N2, OUT_FEATURES)
    ok &= bool(np.allclose(np.asarray(out), np.asarray(ref), rtol=1e-4, atol=1e-4))

    print("KERNEL_OK" if ok else "MISMATCH")
</pallas_src>

<mosaic_0001>
module attributes {stable_mosaic.version = 11 : i64} {
  func.func @_mean_linear_kernel(%arg0: i32, %arg1: i32, %arg2: memref<8x4x16xf32, #tpu.memory_space<vmem>>, %arg3: memref<4x512xf32, #tpu.memory_space<vmem>>, %arg4: memref<1x512xf32, #tpu.memory_space<vmem>>, %arg5: memref<8x512xf32, #tpu.memory_space<vmem>>, %arg6: memref<8x4xf32, #tpu.memory_space<vmem>>) attributes {dimension_semantics = [#tpu.dimension_semantics<parallel>, #tpu.dimension_semantics<arbitrary>], iteration_bounds = array<i64: 1, 1>, scalar_prefetch = 0 : i64, scratch_operands = 1 : i64, tpu.core_type = #tpu.core_type<tc>, window_params = [{transform_indices = @transform_0, window_bounds = array<i64: 8, 4, 16>}, {pipeline_mode = #tpu.pipeline_mode<synchronous>, transform_indices = @transform_1, window_bounds = array<i64: 4, 512>}, {pipeline_mode = #tpu.pipeline_mode<synchronous>, transform_indices = @transform_2, window_bounds = array<i64: 1, 512>}, {transform_indices = @transform_3, window_bounds = array<i64: 8, 512>}]} {
    %c0_i32 = arith.constant 0 : i32
    %0 = arith.cmpi eq, %arg1, %c0_i32 : i32
    %1 = arith.extui %0 : i1 to i32
    %c0_i32_0 = arith.constant 0 : i32
    %2 = arith.cmpi ne, %1, %c0_i32_0 : i32
    scf.if %2 {
      %cst_9 = arith.constant 0.000000e+00 : f32
      %11 = vector.broadcast %cst_9 : f32 to vector<8x4xf32>
      %c0_10 = arith.constant 0 : index
      %c0_11 = arith.constant 0 : index
      %12 = vector.load %arg6[%c0_10, %c0_11] : memref<8x4xf32, #tpu.memory_space<vmem>>, vector<8x4xf32>
      tpu.vector_store %arg6[%c0_10, %c0_11], %11 {strides = array<i32>} : memref<8x4xf32, #tpu.memory_space<vmem>>, vector<8x4xf32>,
    } else {
    }
    %c0 = arith.constant 0 : index
    %c0_1 = arith.constant 0 : index
    %3 = vector.load %arg6[%c0, %c0_1] : memref<8x4xf32, #tpu.memory_space<vmem>>, vector<8x4xf32>
    %c0_2 = arith.constant 0 : index
    %c0_3 = arith.constant 0 : index
    %c0_4 = arith.constant 0 : index
    %4 = vector.load %arg2[%c0_2, %c0_3, %c0_4] : memref<8x4x16xf32, #tpu.memory_space<vmem>>, vector<8x4x16xf32>
    %cst = arith.constant dense<0.000000e+00> : vector<8x4xf32>
    %5 = vector.multi_reduction <add>, %4, %cst [2] : vector<8x4x16xf32> to vector<8x4xf32>
    %6 = arith.addf %3, %5 : vector<8x4xf32>
    %c0_5 = arith.constant 0 : index
    %c0_6 = arith.constant 0 : index
    %7 = vector.load %arg6[%c0_5, %c0_6] : memref<8x4xf32, #tpu.memory_space<vmem>>, vector<8x4xf32>
    tpu.vector_store %arg6[%c0_5, %c0_6], %6 {strides = array<i32>} : memref<8x4xf32, #tpu.memory_space<vmem>>, vector<8x4xf32>,
    %c0_i32_7 = arith.constant 0 : i32
    %8 = arith.cmpi eq, %arg1, %c0_i32_7 : i32
    %9 = arith.extui %8 : i1 to i32
    %c0_i32_8 = arith.constant 0 : i32
    %10 = arith.cmpi ne, %9, %c0_i32_8 : i32
    scf.if %10 {
      %c0_9 = arith.constant 0 : index
      %c0_10 = arith.constant 0 : index
      %11 = vector.load %arg6[%c0_9, %c0_10] : memref<8x4xf32, #tpu.memory_space<vmem>>, vector<8x4xf32>
      %c0_11 = arith.constant 0 : index
      %c0_12 = arith.constant 0 : index
      %12 = vector.load %arg3[%c0_11, %c0_12] : memref<4x512xf32, #tpu.memory_space<vmem>>, vector<4x512xf32>
      %cst_13 = arith.constant dense<0.000000e+00> : vector<8x512xf32>
      %13 = tpu.matmul %11, %12, %cst_13 {dimension_numbers = #tpu.dot_dimension_numbers<[1], [0], [0], [1], [0, 0, 1, 1], [], []>} : vector<8x4xf32>, vector<4x512xf32>, vector<8x512xf32> -> vector<8x512xf32>
      %c0_14 = arith.constant 0 : index
      %c0_15 = arith.constant 0 : index
      %14 = vector.load %arg4[%c0_14, %c0_15] : memref<1x512xf32, #tpu.memory_space<vmem>>, vector<1x512xf32>
      %15 = vector.broadcast %14 : vector<1x512xf32> to vector<8x512xf32>
      %16 = arith.addf %13, %15 : vector<8x512xf32>
      %c0_16 = arith.constant 0 : index
      %c0_17 = arith.constant 0 : index
      %17 = vector.load %arg5[%c0_16, %c0_17] : memref<8x512xf32, #tpu.memory_space<vmem>>, vector<8x512xf32>
      tpu.vector_store %arg5[%c0_16, %c0_17], %16 {strides = array<i32>} : memref<8x512xf32, #tpu.memory_space<vmem>>, vector<8x512xf32>,
    } else {
    }
    return
  }
  func.func @transform_0(%arg0: i32, %arg1: i32) -> (i32, i32, i32) {
    %c0_i32 = arith.constant 0 : i32
    %c0_i32_0 = arith.constant 0 : i32
    return %arg0, %c0_i32, %arg1 : i32, i32, i32
  }
  func.func @transform_1(%arg0: i32, %arg1: i32) -> (i32, i32) {
    %c0_i32 = arith.constant 0 : i32
    %c0_i32_0 = arith.constant 0 : i32
    %c0_i32_1 = arith.constant 0 : i32
    return %c0_i32, %c0_i32_0 : i32, i32
  }
  func.func @transform_2(%arg0: i32, %arg1: i32) -> (i32, i32) {
    %c0_i32 = arith.constant 0 : i32
    %c0_i32_0 = arith.constant 0 : i32
    %c0_i32_1 = arith.constant 0 : i32
    return %c0_i32, %c0_i32_0 : i32, i32
  }
  func.func @transform_3(%arg0: i32, %arg1: i32) -> (i32, i32) {
    %c0_i32 = arith.constant 0 : i32
    %c0_i32_0 = arith.constant 0 : i32
    return %arg0, %c0_i32 : i32, i32
  }
}

</mosaic_0001>

<bundles_post_ra>
// kernel: tpu_custom_call.1
= control target key start
LH: loop header
LB: loop body
LE: loop exit
PB: predicated region body
PF: predicated region fallthrough
CT: control target
= control target key end

     0   :  { %8 = vsyncpa [#allocation4], 0  ;;  %s562_s0 = inlined_call_operand.hbm [shape: f32[2,4,16], index: 0, kind: input, shape index: {}]   ;;  %s563_s1 = inlined_call_operand.hbm [shape: f32[4,512], index: 1, kind: input, shape index: {}]   ;;  %s564_s2 = inlined_call_operand.vmem [shape: f32[1,512], index: 2, kind: input, shape index: {}]   ;;  %s565_s3 = inlined_call_operand.hbm [shape: f32[2,512], index: 3, kind: output, shape index: {}]  }
   0x1   :  { %9 = vsyncpa [#allocation7], 0 }
   0x2   :  { %10 = vsyncpa [#allocation5], 0 }
   0x3   :  { %15 = vsyncadd [#allocation4], 384  ;;  %s482_s12 = smov [#allocation3]   ;;  %s410_s16 = scalar_lea.hbm %s562_s0, 128 }
   0x4   :  { %s16_s13 = sshll.u32 %s482_s12, 4  ;;  %p411_p0 = scmp.ne.s32.totalorder %s562_s0, %s410_s16  ;;  %s17_s13 = int_to_ptr.vmem [resolvable:$true] %s16_s13 }
   0x5   :  { %p414_p1 = scmp.lt.u32.totalorder %s410_s16, %s562_s0 }
   0x7   :  { %p416_p2 = pnand %p414_p1, %p411_p0 }
   0x9   :  { %419 = shalt.err (!%p416_p2)
}
   0xa   :  { %s420_s21 = scalar_lea.vmem %s17_s13, 128  ;;  %s424_s22 = scalar_lea.vmem %s17_s13, 512 }
   0xb   :  { %p421_p3 = scmp.ne.s32.totalorder %s17_s13, %s420_s21  ;;  %p425_p4 = scmp.lt.s32.totalorder %s17_s13, %s17_s13 }
   0xc   :  { %p426_p5 = scmp.lt.s32.totalorder %s424_s22, %s420_s21 }
   0xe   :  { %p427_p6 = por %p426_p5, %p425_p4 }
  0x10   :  { %p428_p7 = pnand %p427_p6, %p421_p3 }
  0x12   :  { %431 = shalt.err (!%p428_p7)
}
  0x13   :  { %s483_s23 = smov 64   ;;  %s484_s24 = smov 4  }
  0x14   :  { %22 = dma.hbm_to_vmem [thread:$0]  %s562_s0, 128, %s17_s13, [#allocation4], %s483_s23, %s483_s23, %s484_s24  }
  0x15   :  { %s485_s27 = smov [#allocation6]   ;;  %s432_s4 = scalar_lea.hbm %s563_s1, 256 }
  0x16   :  { %s29_s28 = sshll.u32 %s485_s27, 4  ;;  %p433_p8 = scmp.ne.s32.totalorder %s563_s1, %s432_s4  ;;  %s30_s28 = int_to_ptr.vmem [resolvable:$true] %s29_s28 }
  0x17   :  { %p436_p9 = scmp.lt.u32.totalorder %s432_s4, %s563_s1 }
  0x19   :  { %p438_p10 = pnand %p436_p9, %p433_p8 }
  0x1b   :  { %441 = shalt.err (!%p438_p10)
}
  0x1c   :  { %s442_s9 = scalar_lea.vmem %s30_s28, 256  ;;  %p447_p12 = scmp.lt.s32.totalorder %s30_s28, %s30_s28 }
  0x1d   :  { %p443_p11 = scmp.ne.s32.totalorder %s30_s28, %s442_s9  ;;  %p448_p13 = scmp.lt.s32.totalorder %s442_s9, %s442_s9 }
  0x1f   :  { %p449_p0 = por %p448_p13, %p447_p12 }
  0x21   :  { %p450_p1 = pnand %p449_p0, %p443_p11 }
  0x23   :  { %453 = shalt.err (!%p450_p1)
}
  0x24   :  { %32 = dma.hbm_to_vmem [thread:$0]  %s563_s1, 256, %s30_s28, [#allocation7]  }
  0x25   :  { %476 = dma.done.wait [#allocation4], 512  }
  0x26   :  { %477 = vsyncadd [#allocation4], 4294966784 }
  0x27   :  { %478 = dma.done.wait [#allocation7], 256  }
  0x28   :  { %479 = vsyncadd [#allocation7], 4294967040  ;;  %vm56_vm0 = vcmask 125952   ;;  %v48_v0 = vld [vmem:[#allocation3] sm:$0xf]  ;;  %vm45_vm1 = vcmask 31744   ;;  %v89_v21 = vlaneseq }
  0x29   :  { %v50_v1 = vld [vmem:[#allocation3 + $0x8] sm:$0xf]  ;;  %v49_v2 = vld [vmem:[#allocation3 + $0x4] sm:$0xf]  ;;  %v57_v3 = vsel %vm56_vm0, %v48_v0, 0.0  ;;  %v486_v16 = vmov 0.0  }
  0x2a   :  { %v63_v4 = vsel %vm56_vm0, %v50_v1, 0.0  ;;  %v51_v5 = vld [vmem:[#allocation3 + $0xc] sm:$0xf]  ;;  %58 = vadd.xlane.f32.xlu0 %v57_v3  ;;  %v60_v6 = vsel %vm56_vm0, %v49_v2, 0.0  ;;  %v52_v8 = vld [vmem:[#allocation3 + $0x10] sm:$0xf]  ;;  %249 = vmatprep.mubr.f32.mxu0 %v486_v16 }
  0x2b   :  { %64 = vadd.xlane.f32.xlu1 %v63_v4  ;;  %v66_v7 = vsel %vm56_vm0, %v51_v5, 0.0  ;;  %v53_v9 = vld [vmem:[#allocation3 + $0x14] sm:$0xf]  ;;  %v69_v10 = vsel %vm56_vm0, %v52_v8, 0.0  ;;  %v54_v12 = vld [vmem:[#allocation3 + $0x18] sm:$0xf]  ;;  %320 = vmatprep.mubr.f32.mxu1 %v486_v16 }
  0x2c   :  { %v72_v11 = vsel %vm56_vm0, %v53_v9, 0.0  ;;  %v55_v13 = vld [vmem:[#allocation3 + $0x1c] sm:$0xf]  ;;  %v75_v14 = vsel %vm56_vm0, %v54_v12, 0.0  ;;  %46 = vst.msk [vmem:[#allocation2] sm:$0xff] %vm45_vm1, %v486_v16  ;;  %v145_v17 = vld [vmem:[#allocation6] sm:$0xff] }
  0x2d   :  { %v78_v15 = vsel %vm56_vm0, %v55_v13, 0.0  ;;  %vm176_vm2 = vcmask 1043456   ;;  %v146_v18 = vld [vmem:[#allocation6 + $0x8] sm:$0xff]  ;;  %v171_v19 = vcombine.high %v145_v17, %v145_v17  ;;  %v90_v22 = vand.u32 127, %v89_v21  ;;  %v147_v53 = vld [vmem:[%s564_s2] sm:$0xf] }
  0x2e   :  { %61 = vadd.xlane.f32.xlu0 %v60_v6  ;;  %v172_v20 = vcombine.high %v146_v18, %v146_v18  ;;  %v92_v23 = vshrl.u32 %v89_v21, 7  ;;  %vm123_vm3 = vcmask 1041409   ;;  %vm125_vm4 = vcmask 1042434  }
  0x2f   :  { %67 = vadd.xlane.f32.xlu1 %v66_v7  ;;  %393 = vmatprep.subr.msk.mxu0 %vm176_vm2, %v171_v19  ;;  %vm127_vm5 = vcmask 1043459   ;;  %vm129_vm6 = vcmask 1044484   ;;  %vm131_vm7 = vcmask 1045509   ;;  %vm133_vm8 = vcmask 1046534  }
  0x30   :  { %396 = vmatprep.subr.msk.mxu1 %vm176_vm2, %v172_v20  ;;  %394 = vmatpush1.msk.msra.mxu0 %vm176_vm2, %v145_v17  ;;  %v93_v26 = vsub.s32 %v90_v22, %v92_v23  ;;  %vm135_vm9 = vcmask 1047559   ;;  %v151_v51 = vsub.s32 0, %v92_v23  ;;  %v159_v52 = vsub.s32 2, %v92_v23 }
  0x31   :  { %397 = vmatpush1.msk.msra.mxu1 %vm176_vm2, %v146_v18  ;;  %v155_v54 = vsub.s32 1, %v92_v23  ;;  %v487_v55 = vmov 1983009808   ;;  %v163_v57 = vsub.s32 3, %v92_v23 }
  0x32   :  { %70 = vadd.xlane.f32.xlu0 %v69_v10  ;;  %v336_v56 = vunpack.c.l.s4 %v487_v55  ;;  %v152_v58 = vrot.slane %v147_v53, %v151_v51  ;;  %v160_v59 = vrot.slane %v147_v53, %v159_v52 }
  0x33   :  { %73 = vadd.xlane.f32.xlu1 %v72_v11  ;;  %v47_v46 = vld [vmem:[#allocation2] sm:$0xff]  ;;  %v156_v60 = vrot.slane %v147_v53, %v155_v54  ;;  %v164_v62 = vrot.slane %v147_v53, %v163_v57 }
  0x34   :  { %v337_v61 = vunpack.c.0.s8 %v336_v56 }
  0x36   :  { %76 = vadd.xlane.f32.xlu0 %v75_v14  ;;  %v340_v6 = vsub.s32 %v337_v61, %v92_v23 }
  0x37   :  { %79 = vadd.xlane.f32.xlu1 %v78_v15 }
  0xb7   :  { %v59_v24 = vpop.xlane.xlu0 %58 }
  0xb8   :  { %v65_v25 = vpop.xlane.xlu1 %64  ;;  %v94_v29 = vrot.slane %v59_v24, %v93_v26 }
  0xb9   :  { %v102_v32 = vrot.slane %v65_v25, %v93_v26 }
  0xbb   :  { %v62_v27 = vpop.xlane.xlu0 %61 }
  0xbc   :  { %v68_v28 = vpop.xlane.xlu1 %67  ;;  %v98_v30 = vrot.slane %v62_v27, %v93_v26 }
  0xbd   :  { %v106_v31 = vrot.slane %v68_v28, %v93_v26 }
  0xbe   :  { %v124_v33 = vsel %vm123_vm3, %v98_v30, %v94_v29 }
  0xbf   :  { %v126_v34 = vsel %vm125_vm4, %v102_v32, %v124_v33  ;;  %v71_v35 = vpop.xlane.xlu0 %70 }
  0xc0   :  { %v74_v36 = vpop.xlane.xlu1 %73  ;;  %v128_v37 = vsel %vm127_vm5, %v106_v31, %v126_v34  ;;  %v110_v38 = vrot.slane %v71_v35, %v93_v26 }
  0xc1   :  { %v114_v39 = vrot.slane %v74_v36, %v93_v26 }
  0xc2   :  { %v130_v40 = vsel %vm129_vm6, %v110_v38, %v128_v37 }
  0xc3   :  { %v77_v41 = vpop.xlane.xlu0 %76  ;;  %v132_v45 = vsel %vm131_vm7, %v114_v39, %v130_v40 }
  0xc4   :  { %v80_v42 = vpop.xlane.xlu1 %79  ;;  %v118_v43 = vrot.slane %v77_v41, %v93_v26 }
  0xc5   :  { %v122_v44 = vrot.slane %v80_v42, %v93_v26 }
  0xc6   :  { %v134_v47 = vsel %vm133_vm8, %v118_v43, %v132_v45 }
  0xc7   :  { %v136_v48 = vsel %vm135_vm9, %v122_v44, %v134_v47 }
  0xc8   :  { %v138_v49 = vadd.f32 %v136_v48, %v47_v46 }
  0xca   :  { %140 = vst.msk [vmem:[#allocation2] sm:$0xff] %vm45_vm1, %v138_v49 }
  0xd1   :  { %v144_v50 = vld [vmem:[#allocation2] sm:$0xff] }
  0xd2   :  { %395 = vmatmul.mubr.msk.f32.vlgmr.msra.gmra.mrb[0].mxu0 %vm45_vm1, %v144_v50  ;;  %398 = vmatmul.mubr.msk.f32.vlgmr.msra.gmra.mrb[0].mxu1 %vm45_vm1, %v144_v50 }
 0x1a5   :  { %v251_v63 = vpop.f32.mrb[0].mxu0  ;;  %v322_v0 = vpop.f32.mrb[0].mxu1 }
 0x1a6   :  { %v252_v1 = vadd.f32 %v251_v63, %v152_v58  ;;  %v323_v2 = vadd.f32 %v322_v0, %v160_v59  ;;  %v253_v3 = vpop.f32.mrb[1].mxu0  ;;  %v324_v4 = vpop.f32.mrb[1].mxu1 }
 0x1a7   :  { %v254_v5 = vadd.f32 %v253_v3, %v156_v60  ;;  %v325_v7 = vadd.f32 %v324_v4, %v164_v62 }
 0x1a9   :  { %v331_v8 = vcombine.low %v252_v1, %v254_v5  ;;  %v332_v9 = vcombine.high %v252_v1, %v254_v5  ;;  %v333_v10 = vcombine.low %v323_v2, %v325_v7  ;;  %v334_v11 = vcombine.high %v323_v2, %v325_v7 }
 0x1ab   :  { %v341_v12 = vrot.slane %v331_v8, %v340_v6  ;;  %v348_v13 = vrot.slane %v332_v9, %v340_v6  ;;  %v355_v14 = vrot.slane %v333_v10, %v340_v6  ;;  %v362_v15 = vrot.slane %v334_v11, %v340_v6 }
 0x1ad   :  { %v363_v16 = vcombine.low %v341_v12, %v355_v14  ;;  %v364_v17 = vcombine.high %v341_v12, %v355_v14  ;;  %v365_v18 = vcombine.low %v348_v13, %v362_v15  ;;  %v366_v19 = vcombine.high %v348_v13, %v362_v15 }
 0x1af   :  { %371 = vst [vmem:[#allocation8] sm:$0xff] %v363_v16  ;;  %372 = vst [vmem:[#allocation8 + $0x8] sm:$0xff] %v364_v17 }
 0x1b0   :  { %373 = vst [vmem:[#allocation8 + $0x10] sm:$0xff] %v365_v18  ;;  %374 = vst [vmem:[#allocation8 + $0x18] sm:$0xff] %v366_v19 }
 0x1b1   :  { %379 = vsyncadd [#allocation5], 384  ;;  %s488_s2 = smov [#allocation8]  }
 0x1b2   :  { %s380_s12 = sshll.u32 %s488_s2, 4  ;;  %s381_s12 = int_to_ptr.vmem [resolvable:$true] %s380_s12 }
 0x1b3   :  { %s454_s13 = scalar_lea.vmem %s381_s12, 128  ;;  %s458_s14 = scalar_lea.vmem %s381_s12, 512 }
 0x1b4   :  { %p455_p2 = scmp.ne.s32.totalorder %s381_s12, %s454_s13  ;;  %p459_p3 = scmp.lt.s32.totalorder %s381_s12, %s381_s12 }
 0x1b5   :  { %p460_p4 = scmp.lt.s32.totalorder %s458_s14, %s454_s13 }
 0x1b7   :  { %p461_p5 = por %p460_p4, %p459_p3 }
 0x1b9   :  { %p462_p6 = pnand %p461_p5, %p455_p2 }
 0x1bb   :  { %465 = shalt.err (!%p462_p6)
}
 0x1bc   :  { %s466_s17 = scalar_lea.hbm %s565_s3, 128 }
 0x1bd   :  { %p467_p7 = scmp.ne.s32.totalorder %s565_s3, %s466_s17  ;;  %p470_p8 = scmp.lt.u32.totalorder %s466_s17, %s565_s3 }
 0x1bf   :  { %p472_p9 = pnand %p470_p8, %p467_p7 }
 0x1c1   :  { %475 = shalt.err (!%p472_p9)
}
 0x1c2   :  { %s489_s22 = smov 128   ;;  %s490_s23 = smov 8  }
 0x1c3   :  { %386 = dma.vmem_to_hbm [thread:$0]  %s381_s12, 128, %s565_s3, [#allocation5], %s489_s22, %s489_s22, %s490_s23  }
 0x1c4   :  { %480 = dma.done.wait [#allocation5], 512  }
 0x1c5   :  { %481 = vsyncadd [#allocation5], 4294966784 }
 0x1c6   :  { %390 = vsyncpa [#allocation4], 1 }
 0x1c7   :  { %391 = vsyncpa [#allocation7], 1 }
 0x1c8   :  { %392 = vsyncpa [#allocation5], 1 }

</bundles_post_ra>
